<compile_context>
chip_gen: v7x
topology: tpu7x:2x2x1
jax: 0.10.0
libtpu: 0.0.40
codegen_flags: <defaults>
</compile_context>

<pallas_src>
import math
import functools

import numpy as np
import jax
import jax.numpy as jnp
from jax import lax
from jax.experimental import pallas as pl
from jax.experimental.pallas import tpu as pltpu

# Hyperparameters that are free (undefined) globals in the fuzzed module.
DROPOUT_P = 0.0                 # dropout_p (0.0 == eval-mode / identity)
# inv_scale_factor = sqrt(d_head); qk is divided by it (standard attention scale)

_MASK_VAL = -1e30               # exp(mask - m) underflows to exactly 0
_VMEM_BUDGET_BYTES = 24 * 1024 * 1024   # conservative single-invocation budget (v7x-safe)


def _precise_reciprocal(x):
    # EUP approximate reciprocal (separate issue slot, essentially free) plus
    # one Newton-Raphson refinement so f32 accuracy (1e-4 tolerance) holds.
    r = pl.reciprocal(x, approx=True)
    return r * (2.0 - x * r)


def _attn_flat_kernel(rowid_ref, colid_ref, q_ref, k_ref, v_ref, o_ref, *, scale):
    # Whole (B*H*S, D) problem resident in VMEM; two well-shaped MXU matmuls.
    q = q_ref[...] * scale                       # fold 1/sqrt(D) into Q (N x D, cheap)
    k = k_ref[...]
    v = v_ref[...]

    # scores[i, j] = <q_i, k_j>  -- single (N,D)x(D,N) contraction, no explicit K^T.
    scores = lax.dot_general(q, k, (((1,), (1,)), ((), ())),
                             preferred_element_type=jnp.float32)

    # Block-diagonal mask: only rows/cols from the same (batch, head) attend.
    same = rowid_ref[...] == colid_ref[...]      # (N,1)==(1,N) -> (N,N) bool
    scores = jnp.where(same, scores, _MASK_VAL)

    # Numerically stable softmax with deferred normalization (flash style).
    m = jnp.max(scores, axis=-1, keepdims=True)
    e = jnp.exp(scores - m)                      # off-block entries become exactly 0
    denom = jnp.sum(e, axis=-1, keepdims=True)

    raw = jnp.dot(e, v, preferred_element_type=jnp.float32)   # (N, D)
    o_ref[...] = (raw * _precise_reciprocal(denom)).astype(o_ref.dtype)


def _attn_flat_dropout_kernel(seed_ref, rowid_ref, colid_ref, q_ref, k_ref, v_ref,
                              o_ref, *, scale, dropout_p):
    n = q_ref.shape[0]
    # PRNG work is data-independent: issue it first so it overlaps MXU work.
    pltpu.prng_seed(seed_ref[0])
    bits = pltpu.bitcast(pltpu.prng_random_bits((n, n)), jnp.uint32)
    thresh = jnp.uint32(min(int(dropout_p * 4294967296.0), 4294967295))
    keep = bits >= thresh                        # P(keep) = 1 - dropout_p

    q = q_ref[...] * scale
    k = k_ref[...]
    v = v_ref[...]

    scores = lax.dot_general(q, k, (((1,), (1,)), ((), ())),
                             preferred_element_type=jnp.float32)
    same = rowid_ref[...] == colid_ref[...]
    scores = jnp.where(same, scores, _MASK_VAL)

    m = jnp.max(scores, axis=-1, keepdims=True)
    e = jnp.exp(scores - m)
    denom = jnp.sum(e, axis=-1, keepdims=True)

    # Fused dropout: zero dropped probabilities before the PV matmul; fold the
    # 1/(1-p) rescale together with the deferred softmax 1/denom afterwards.
    e = jnp.where(keep, e, 0.0)
    raw = jnp.dot(e, v, preferred_element_type=jnp.float32)
    inv = _precise_reciprocal(denom) * (1.0 / (1.0 - dropout_p))
    o_ref[...] = (raw * inv).astype(o_ref.dtype)


def _attn_per_head_kernel(q_ref, k_ref, v_ref, o_ref, *, scale):
    # Large-shape fallback: one (batch*head) slice per grid step.
    q = q_ref[0] * scale                         # (S, D)
    k = k_ref[0]
    v = v_ref[0]
    scores = lax.dot_general(q, k, (((1,), (1,)), ((), ())),
                             preferred_element_type=jnp.float32)
    m = jnp.max(scores, axis=-1, keepdims=True)
    e = jnp.exp(scores - m)
    denom = jnp.sum(e, axis=-1, keepdims=True)
    raw = jnp.dot(e, v, preferred_element_type=jnp.float32)
    o_ref[0] = (raw * _precise_reciprocal(denom)).astype(o_ref.dtype)


def attention(query, key, value, *, dropout_p=DROPOUT_P, seed=0):
    B, H, S, D = query.shape
    assert key.shape == (B, H, S, D) and value.shape == (B, H, S, D)
    assert 0.0 <= dropout_p < 1.0, "dropout_p must be in [0, 1)"
    inv_scale_factor = math.sqrt(D)
    scale = 1.0 / inv_scale_factor

    BH = B * H
    N = BH * S
    itemsize = jnp.dtype(query.dtype).itemsize

    cost = pl.CostEstimate(
        flops=4 * BH * S * S * D,          # two matmuls
        transcendentals=BH * S * S,        # exp in softmax
        bytes_accessed=4 * BH * S * D * itemsize,
    )

    # Conservative VMEM estimate of the flattened single-invocation design:
    # q/k/v/out (N*D each) plus ~3 live N*N f32 score-sized temporaries.
    flat_vmem_bytes = 4 * N * D * itemsize + 3 * N * N * 4
    use_flat = flat_vmem_bytes <= _VMEM_BUDGET_BYTES

    if dropout_p > 0.0 or use_flat:
        # TODO(synk): for dropout_p > 0 with shapes too large for single-invocation
        # VMEM residency, a gridded flash-style dropout kernel would be needed.
        qf = query.reshape(N, D)
        kf = key.reshape(N, D)
        vf = value.reshape(N, D)
        bid = np.repeat(np.arange(BH, dtype=np.int32), S)
        row_ids = jnp.asarray(bid.reshape(N, 1))
        col_ids = jnp.asarray(bid.reshape(1, N))
        out_shape = jax.ShapeDtypeStruct((N, D), query.dtype)
        vmem = pl.BlockSpec(memory_space=pltpu.MemorySpace.VMEM)

        if dropout_p > 0.0:
            kernel = functools.partial(
                _attn_flat_dropout_kernel, scale=scale, dropout_p=float(dropout_p))
            seed_arr = jnp.array([seed], dtype=jnp.int32)
            out = pl.pallas_call(
                kernel,
                out_shape=out_shape,
                in_specs=[pl.BlockSpec(memory_space=pltpu.MemorySpace.SMEM),  # seed
                          vmem, vmem, vmem, vmem, vmem],
                out_specs=vmem,
                cost_estimate=cost,
            )(seed_arr, row_ids, col_ids, qf, kf, vf)
        else:
            kernel = functools.partial(_attn_flat_kernel, scale=scale)
            out = pl.pallas_call(
                kernel,
                out_shape=out_shape,
                in_specs=[vmem, vmem, vmem, vmem, vmem],
                out_specs=vmem,
                cost_estimate=cost,
            )(row_ids, col_ids, qf, kf, vf)
        return out.reshape(B, H, S, D)

    # Large-shape fallback: grid over (batch*head); grid axis sharded across
    # TensorCores on v7x via "parallel" semantics.
    q = query.reshape(BH, S, D)
    k = key.reshape(BH, S, D)
    v = value.reshape(BH, S, D)
    kernel = functools.partial(_attn_per_head_kernel, scale=scale)
    out = pl.pallas_call(
        kernel,
        out_shape=jax.ShapeDtypeStruct((BH, S, D), query.dtype),
        grid=(BH,),
        in_specs=[pl.BlockSpec((1, S, D), lambda i: (i, 0, 0))] * 3,
        out_specs=pl.BlockSpec((1, S, D), lambda i: (i, 0, 0)),
        compiler_params=pltpu.CompilerParams(dimension_semantics=("parallel",)),
        cost_estimate=cost,
    )(q, k, v)
    return out.reshape(B, H, S, D)


def _reference(query, key, value, inv_scale_factor):
    qk = jnp.einsum("bhqd,bhkd->bhqk", query, key) / inv_scale_factor
    p = jax.nn.softmax(qk, axis=-1)
    # dropout_p = 0.0 -> identity
    return jnp.einsum("bhqk,bhkd->bhqd", p, value)


if __name__ == "__main__":
    # Shapes match the module's example inputs: (1, 8, 20, 20).
    B, H, S, D = 1, 8, 20, 20
    k0, k1, k2 = jax.random.split(jax.random.PRNGKey(0), 3)
    query = jax.random.normal(k0, (B, H, S, D), dtype=jnp.float32)
    key = jax.random.normal(k1, (B, H, S, D), dtype=jnp.float32)
    value = jax.random.normal(k2, (B, H, S, D), dtype=jnp.float32)

    out = jax.block_until_ready(attention(query, key, value))

    ref = _reference(query, key, value, math.sqrt(D))
    assert out.shape == (B, H, S, D)
    assert jnp.allclose(out, ref, atol=1e-4, rtol=1e-4), "mismatch vs reference"
    print("KERNEL_OK")
</pallas_src>

<mosaic_0001>
module attributes {stable_mosaic.version = 11 : i64} {
  func.func @_attn_flat_kernel(%arg0: memref<160x1xi32, #tpu.memory_space<vmem>>, %arg1: memref<1x160xi32, #tpu.memory_space<vmem>>, %arg2: memref<160x20xf32, #tpu.memory_space<vmem>>, %arg3: memref<160x20xf32, #tpu.memory_space<vmem>>, %arg4: memref<160x20xf32, #tpu.memory_space<vmem>>, %arg5: memref<160x20xf32, #tpu.memory_space<vmem>>) attributes {dimension_semantics = [], scalar_prefetch = 0 : i64, scratch_operands = 0 : i64, tpu.core_type = #tpu.core_type<tc>} {
    %c0 = arith.constant 0 : index
    %c0_0 = arith.constant 0 : index
    %0 = vector.load %arg2[%c0, %c0_0] : memref<160x20xf32, #tpu.memory_space<vmem>>, vector<160x20xf32>
    %cst = arith.constant 0.223606795 : f32
    %1 = vector.broadcast %cst : f32 to vector<160x20xf32>
    %2 = arith.mulf %0, %1 : vector<160x20xf32>
    %c0_1 = arith.constant 0 : index
    %c0_2 = arith.constant 0 : index
    %3 = vector.load %arg3[%c0_1, %c0_2] : memref<160x20xf32, #tpu.memory_space<vmem>>, vector<160x20xf32>
    %c0_3 = arith.constant 0 : index
    %c0_4 = arith.constant 0 : index
    %4 = vector.load %arg4[%c0_3, %c0_4] : memref<160x20xf32, #tpu.memory_space<vmem>>, vector<160x20xf32>
    %cst_5 = arith.constant dense<0.000000e+00> : vector<160x160xf32>
    %5 = tpu.matmul %2, %3, %cst_5 {dimension_numbers = #tpu.dot_dimension_numbers<[1], [1], [0], [0], [0, 0, 1, 0], [], []>} : vector<160x20xf32>, vector<160x20xf32>, vector<160x160xf32> -> vector<160x160xf32>
    %c0_6 = arith.constant 0 : index
    %c0_7 = arith.constant 0 : index
    %6 = vector.load %arg0[%c0_6, %c0_7] : memref<160x1xi32, #tpu.memory_space<vmem>>, vector<160x1xi32>
    %c0_8 = arith.constant 0 : index
    %c0_9 = arith.constant 0 : index
    %7 = vector.load %arg1[%c0_8, %c0_9] : memref<1x160xi32, #tpu.memory_space<vmem>>, vector<1x160xi32>
    %8 = vector.broadcast %6 : vector<160x1xi32> to vector<160x160xi32>
    %9 = vector.broadcast %7 : vector<1x160xi32> to vector<160x160xi32>
    %10 = arith.cmpi eq, %8, %9 : vector<160x160xi32>
    %cst_10 = arith.constant -1.000000e+30 : f32
    %11 = vector.broadcast %cst_10 : f32 to vector<160x160xf32>
    %12 = arith.select %10, %5, %11 : vector<160x160xi1>, vector<160x160xf32>
    %cst_11 = arith.constant dense<0xFF800000> : vector<160xf32>
    %13 = vector.multi_reduction <maximumf>, %12, %cst_11 [1] : vector<160x160xf32> to vector<160xf32>
    %14 = vector.shape_cast %13 : vector<160xf32> to vector<160x1xf32>
    %15 = vector.broadcast %14 : vector<160x1xf32> to vector<160x160xf32>
    %16 = arith.subf %12, %15 : vector<160x160xf32>
    %17 = math.exp %16 : vector<160x160xf32>
    %cst_12 = arith.constant dense<0.000000e+00> : vector<160xf32>
    %18 = vector.multi_reduction <add>, %17, %cst_12 [1] : vector<160x160xf32> to vector<160xf32>
    %19 = vector.shape_cast %18 : vector<160xf32> to vector<160x1xf32>
    %cst_13 = arith.constant dense<0.000000e+00> : vector<160x20xf32>
    %20 = tpu.matmul %17, %4, %cst_13 {dimension_numbers = #tpu.dot_dimension_numbers<[1], [0], [0], [1], [0, 0, 1, 1], [], []>} : vector<160x160xf32>, vector<160x20xf32>, vector<160x20xf32> -> vector<160x20xf32>
    %21 = tpu.reciprocal %19 {approx = true} : vector<160x1xf32> -> vector<160x1xf32>
    %22 = arith.mulf %19, %21 : vector<160x1xf32>
    %cst_14 = arith.constant 2.000000e+00 : f32
    %23 = vector.broadcast %cst_14 : f32 to vector<160x1xf32>
    %24 = arith.subf %23, %22 : vector<160x1xf32>
    %25 = arith.mulf %21, %24 : vector<160x1xf32>
    %26 = vector.broadcast %25 : vector<160x1xf32> to vector<160x20xf32>
    %27 = arith.mulf %20, %26 : vector<160x20xf32>
    %c0_15 = arith.constant 0 : index
    %c0_16 = arith.constant 0 : index
    %28 = vector.load %arg5[%c0_15, %c0_16] : memref<160x20xf32, #tpu.memory_space<vmem>>, vector<160x20xf32>
    tpu.vector_store %arg5[%c0_15, %c0_16], %27 {strides = array<i32>} : memref<160x20xf32, #tpu.memory_space<vmem>>, vector<160x20xf32>,
    return
  }
}

</mosaic_0001>

<bundles_post_ra>
// kernel: tpu_custom_call.1
= control target key start
LH: loop header
LB: loop body
LE: loop exit
PB: predicated region body
PF: predicated region fallthrough
CT: control target
= control target key end

     0   :  { %vm100_vm0 = vcmask 162816   ;;  %v1460_v0 = vmov 0.0|0.0   ;;  %v1461_v4 = vmov 0.0   ;;  %v1462_v6 = vmov 0   ;;  %s2208_s3 = inlined_call_operand.vmem [shape: f32[160,20], index: 3, kind: input, shape index: {}]   ;;  %s2209_s0 = inlined_call_operand.vmem [shape: s32[160,1], index: 0, kind: input, shape index: {}]   ;;  %s2210_s2 = inlined_call_operand.vmem [shape: f32[160,20], index: 2, kind: input, shape index: {}]   ;;  %s2211_s4 = inlined_call_operand.vmem [shape: f32[160,20], index: 4, kind: input, shape index: {}]   ;;  %s2212_s1 = inlined_call_operand.vmem [shape: s32[1,160], index: 1, kind: input, shape index: {}]   ;;  %s2213_s5 = inlined_call_operand.vmem [shape: f32[160,20], index: 5, kind: output, shape index: {}]  }
   0x1   :  { %1265 = vmatprep.subr.bf16.mxu0 %v1460_v0  ;;  %v60_v1 = vld [vmem:[%s2208_s3] sm:$0xff]  ;;  %v61_v2 = vld [vmem:[%s2208_s3 + $0x8] sm:$0xff]  ;;  %vm1502_vm1 = vmpackc.low %vm100_vm0, %vm100_vm0  ;;  %285 = vmatprep.mubr.f32.mxu0 %v1461_v4  ;;  %vm575_vm4 = vcmask 261120  }
   0x2   :  { %v1266_v5 = vpack.c.bf16 %v61_v2, %v60_v1  ;;  %1305 = vmatprep.subr.bf16.mxu1 %v1460_v0  ;;  %1338 = vset.pattern.permute.xlu0 %v1462_v6  ;;  %v62_v7 = vld [vmem:[%s2208_s3 + $0x10] sm:$0xff]  ;;  %v63_v8 = vld [vmem:[%s2208_s3 + $0x18] sm:$0xff]  ;;  %v64_v10 = vld [vmem:[%s2208_s3 + $0x20] sm:$0xff] }
   0x3   :  { %1339 = vset.pattern.permute.xlu1 %v1462_v6  ;;  %v1270_v9 = vpack.c.bf16 %v63_v8, %v62_v7  ;;  %v65_v11 = vld [vmem:[%s2208_s3 + $0x28] sm:$0xff]  ;;  %v406_v13 = vld [vmem:[%s2209_s0] sm:$0xff]  ;;  %v66_v15 = vld [vmem:[%s2208_s3 + $0x30] sm:$0xff] }
   0x4   :  { %1268 = vmatpush1.bf16.xpose.msk.msra.mxu0 %vm1502_vm1, %v1266_v5  ;;  %v1274_v12 = vpack.c.bf16 %v65_v11, %v64_v10  ;;  %428 = vperm.xlu0 %1338, %v406_v13   ;;  %v407_v14 = vld [vmem:[%s2209_s0 + $0x8] sm:$0xff]  ;;  %v67_v16 = vld [vmem:[%s2208_s3 + $0x38] sm:$0xff]  ;;  %v410_v17 = vld [vmem:[%s2209_s0 + $0x20] sm:$0xff] }
   0x5   :  { %1269 = vmatprep.subr.bf16.mxu0 %v1460_v0  ;;  %v1278_v18 = vpack.c.bf16 %v67_v16, %v66_v15  ;;  %v412_v19 = vld [vmem:[%s2209_s0 + $0x30] sm:$0xff]  ;;  %v68_v21 = vld [vmem:[%s2208_s3 + $0x40] sm:$0xff]  ;;  %v69_v22 = vld [vmem:[%s2208_s3 + $0x48] sm:$0xff] }
   0x6   :  { %v408_v20 = vld [vmem:[%s2209_s0 + $0x10] sm:$0xff]  ;;  %v414_v23 = vld [vmem:[%s2209_s0 + $0x40] sm:$0xff]  ;;  %v409_v24 = vld [vmem:[%s2209_s0 + $0x18] sm:$0xff]  ;;  %v1282_v25 = vpack.c.bf16 %v69_v22, %v68_v21 }
   0x7   :  { %434 = vperm.xlu1 %1339, %v408_v20   ;;  %v416_v26 = vld [vmem:[%s2209_s0 + $0x50] sm:$0xff]  ;;  %v411_v27 = vld [vmem:[%s2209_s0 + $0x28] sm:$0xff]  ;;  %v71_v29 = vld [vmem:[%s2208_s3 + $0x58] sm:$0xff] }
   0x8   :  { %431 = vperm.xlu0 %1338, %v407_v14   ;;  %v70_v28 = vld [vmem:[%s2208_s3 + $0x50] sm:$0xff]  ;;  %v418_v30 = vld [vmem:[%s2209_s0 + $0x60] sm:$0xff]  ;;  %v413_v31 = vld [vmem:[%s2209_s0 + $0x38] sm:$0xff] }
   0x9   :  { %v1286_v32 = vpack.c.bf16 %v71_v29, %v70_v28  ;;  %v420_v33 = vld [vmem:[%s2209_s0 + $0x70] sm:$0xff]  ;;  %v415_v34 = vld [vmem:[%s2209_s0 + $0x48] sm:$0xff]  ;;  %v72_v35 = vld [vmem:[%s2208_s3 + $0x60] sm:$0xff] }
   0xa   :  { %v73_v36 = vld [vmem:[%s2208_s3 + $0x68] sm:$0xff]  ;;  %v422_v37 = vld [vmem:[%s2209_s0 + $0x80] sm:$0xff]  ;;  %v417_v38 = vld [vmem:[%s2209_s0 + $0x58] sm:$0xff] }
   0xb   :  { %437 = vperm.xlu1 %1339, %v409_v24   ;;  %v1290_v39 = vpack.c.bf16 %v73_v36, %v72_v35  ;;  %v419_v40 = vld [vmem:[%s2209_s0 + $0x68] sm:$0xff]  ;;  %v74_v41 = vld [vmem:[%s2208_s3 + $0x70] sm:$0xff]  ;;  %v75_v42 = vld [vmem:[%s2208_s3 + $0x78] sm:$0xff] }
   0xc   :  { %1272 = vmatpush1.bf16.xpose.msk.msra.mxu0 %vm1502_vm1, %v1270_v9  ;;  %440 = vperm.xlu0 %1338, %v410_v17   ;;  %v421_v43 = vld [vmem:[%s2209_s0 + $0x78] sm:$0xff]  ;;  %v1294_v44 = vpack.c.bf16 %v75_v42, %v74_v41  ;;  %v423_v45 = vld [vmem:[%s2209_s0 + $0x88] sm:$0xff]  ;;  %v76_v46 = vld [vmem:[%s2208_s3 + $0x80] sm:$0xff] }
   0xd   :  { %1273 = vmatprep.subr.bf16.mxu0 %v1460_v0  ;;  %v77_v47 = vld [vmem:[%s2208_s3 + $0x88] sm:$0xff]  ;;  %v424_v48 = vld [vmem:[%s2209_s0 + $0x90] sm:$0xff]  ;;  %v79_v51 = vld [vmem:[%s2208_s3 + $0x98] sm:$0xff] }
   0xe   :  { %v1298_v49 = vpack.c.bf16 %v77_v47, %v76_v46  ;;  %v78_v50 = vld [vmem:[%s2208_s3 + $0x90] sm:$0xff]  ;;  %v20_v53 = vld [vmem:[%s2210_s2] sm:$0xff]  ;;  %v21_v55 = vld [vmem:[%s2210_s2 + $0x8] sm:$0xff] }
   0xf   :  { %443 = vperm.xlu1 %1339, %v411_v27   ;;  %v1302_v52 = vpack.c.bf16 %v79_v51, %v78_v50  ;;  %v40_v54 = vmul.f32 0.2236068, %v20_v53  ;;  %v41_v56 = vmul.f32 0.2236068, %v21_v55  ;;  %v22_v57 = vld [vmem:[%s2210_s2 + $0x10] sm:$0xff]  ;;  %v23_v59 = vld [vmem:[%s2210_s2 + $0x18] sm:$0xff] }
  0x10   :  { %446 = vperm.xlu0 %1338, %v412_v19   ;;  %v42_v58 = vmul.f32 0.2236068, %v22_v57  ;;  %v43_v60 = vmul.f32 0.2236068, %v23_v59  ;;  %v24_v61 = vld [vmem:[%s2210_s2 + $0x20] sm:$0xff]  ;;  %v25_v63 = vld [vmem:[%s2210_s2 + $0x28] sm:$0xff] }
  0x11   :  { %v44_v62 = vmul.f32 0.2236068, %v24_v61  ;;  %v45_v1 = vmul.f32 0.2236068, %v25_v63  ;;  %v26_v2 = vld [vmem:[%s2210_s2 + $0x30] sm:$0xff]  ;;  %v27_v5 = vld [vmem:[%s2210_s2 + $0x38] sm:$0xff] }
  0x12   :  { %v46_v3 = vmul.f32 0.2236068, %v26_v2  ;;  %v47_v6 = vmul.f32 0.2236068, %v27_v5  ;;  %v28_v7 = vld [vmem:[%s2210_s2 + $0x40] sm:$0xff]  ;;  %v29_v9 = vld [vmem:[%s2210_s2 + $0x48] sm:$0xff] }
  0x13   :  { %449 = vperm.xlu1 %1339, %v413_v31   ;;  %v48_v8 = vmul.f32 0.2236068, %v28_v7  ;;  %v49_v10 = vmul.f32 0.2236068, %v29_v9  ;;  %v30_v11 = vld [vmem:[%s2210_s2 + $0x50] sm:$0xff]  ;;  %v31_v13 = vld [vmem:[%s2210_s2 + $0x58] sm:$0xff] }
  0x14   :  { %1276 = vmatpush1.bf16.xpose.msk.msra.mxu0 %vm1502_vm1, %v1274_v12  ;;  %452 = vperm.xlu0 %1338, %v414_v23   ;;  %v50_v12 = vmul.f32 0.2236068, %v30_v11  ;;  %v51_v14 = vmul.f32 0.2236068, %v31_v13  ;;  %v32_v15 = vld [vmem:[%s2210_s2 + $0x60] sm:$0xff]  ;;  %v33_v17 = vld [vmem:[%s2210_s2 + $0x68] sm:$0xff] }
  0x15   :  { %1277 = vmatprep.subr.bf16.mxu0 %v1460_v0  ;;  %v52_v16 = vmul.f32 0.2236068, %v32_v15  ;;  %v34_v19 = vld [vmem:[%s2210_s2 + $0x70] sm:$0xff]  ;;  %v35_v21 = vld [vmem:[%s2210_s2 + $0x78] sm:$0xff]  ;;  %v36_v23 = vld [vmem:[%s2210_s2 + $0x80] sm:$0xff] }
  0x16   :  { %v54_v20 = vmul.f32 0.2236068, %v34_v19  ;;  %v55_v22 = vmul.f32 0.2236068, %v35_v21  ;;  %v56_v24 = vmul.f32 0.2236068, %v36_v23 }
  0x17   :  { %455 = vperm.xlu1 %1339, %v415_v34   ;;  %v38_v27 = vld [vmem:[%s2210_s2 + $0x90] sm:$0xff]  ;;  %v39_v29 = vld [vmem:[%s2210_s2 + $0x98] sm:$0xff]  ;;  %v80_v31 = vld [vmem:[%s2211_s4] sm:$0xff] }
  0x18   :  { %458 = vperm.xlu0 %1338, %v416_v26   ;;  %v58_v28 = vmul.f32 0.2236068, %v38_v27  ;;  %v83_v35 = vld [vmem:[%s2211_s4 + $0x18] sm:$0xff]  ;;  %v84_v36 = vld [vmem:[%s2211_s4 + $0x20] sm:$0xff] }
  0x19   :  { %v88_v42 = vld [vmem:[%s2211_s4 + $0x40] sm:$0xff]  ;;  %v91_v46 = vld [vmem:[%s2211_s4 + $0x58] sm:$0xff] }
  0x1a   :  { %v426_v51 = vld [vmem:[%s2212_s1] sm:$0x3] }
  0x1b   :  { %461 = vperm.xlu1 %1339, %v417_v38  }
  0x1c   :  { %1280 = vmatpush1.bf16.xpose.msk.msra.mxu0 %vm1502_vm1, %v1278_v18  ;;  %464 = vperm.xlu0 %1338, %v418_v30   ;;  %v53_v18 = vmul.f32 0.2236068, %v33_v17  ;;  %v59_v30 = vmul.f32 0.2236068, %v39_v29  ;;  %v93_v29 = vld [vmem:[%s2211_s4 + $0x68] sm:$0xff] }
  0x1d   :  { %1281 = vmatprep.subr.bf16.mxu0 %v1460_v0 }
  0x1f   :  { %467 = vperm.xlu1 %1339, %v419_v40   ;;  %v87_v40 = vld [vmem:[%s2211_s4 + $0x38] sm:$0xff] }
  0x20   :  { %470 = vperm.xlu0 %1338, %v420_v33   ;;  %v82_v33 = vld [vmem:[%s2211_s4 + $0x10] sm:$0xff] }
  0x23   :  { %473 = vperm.xlu1 %1339, %v421_v43   ;;  %v89_v43 = vld [vmem:[%s2211_s4 + $0x48] sm:$0xff] }
  0x24   :  { %1284 = vmatpush1.bf16.xpose.msk.msra.mxu0 %vm1502_vm1, %v1282_v25  ;;  %476 = vperm.xlu0 %1338, %v422_v37   ;;  %v37_v25 = vld [vmem:[%s2210_s2 + $0x88] sm:$0xff] }
  0x25   :  { %1285 = vmatprep.subr.bf16.mxu0 %v1460_v0  ;;  %v57_v26 = vmul.f32 0.2236068, %v37_v25  ;;  %v85_v37 = vld [vmem:[%s2211_s4 + $0x28] sm:$0xff] }
  0x26   :  { %v1312_v38 = vpack.c.bf16 %v85_v37, %v84_v36  ;;  %v94_v37 = vld [vmem:[%s2211_s4 + $0x70] sm:$0xff] }
  0x27   :  { %479 = vperm.xlu1 %1339, %v423_v45   ;;  %v90_v45 = vld [vmem:[%s2211_s4 + $0x50] sm:$0xff] }
  0x28   :  { %v1321_v47 = vpack.c.bf16 %v91_v46, %v90_v45  ;;  %v96_v45 = vld [vmem:[%s2211_s4 + $0x80] sm:$0xff]  ;;  %v97_v46 = vld [vmem:[%s2211_s4 + $0x88] sm:$0xff] }
  0x2b   :  { %482 = vperm.xlu1 %1339, %v424_v48   ;;  %v487_v48 = vlaneseq }
  0x2c   :  { %1288 = vmatpush1.bf16.xpose.msk.msra.mxu0 %vm1502_vm1, %v1286_v32  ;;  %v81_v32 = vld [vmem:[%s2211_s4 + $0x8] sm:$0xff] }
  0x2d   :  { %1289 = vmatprep.subr.bf16.mxu0 %v1460_v0  ;;  %v1306_v34 = vpack.c.bf16 %v81_v32, %v80_v31 }
  0x2f   :  { %1307 = vmatpush1.bf16.msra.mxu1 %v1306_v34 }
  0x30   :  { %1308 = vmatprep.subr.bf16.mxu1 %v1460_v0 }
  0x34   :  { %1292 = vmatpush1.bf16.xpose.msk.msra.mxu0 %vm1502_vm1, %v1290_v39  ;;  %v86_v39 = vld [vmem:[%s2211_s4 + $0x30] sm:$0xff] }
  0x35   :  { %1293 = vmatprep.subr.bf16.mxu0 %v1460_v0  ;;  %v1315_v41 = vpack.c.bf16 %v87_v40, %v86_v39 }
  0x3c   :  { %1296 = vmatpush1.bf16.xpose.msk.msra.mxu0 %vm1502_vm1, %v1294_v44  ;;  %v1318_v44 = vpack.c.bf16 %v89_v43, %v88_v42  ;;  %v425_v43 = vld [vmem:[%s2209_s0 + $0x98] sm:$0xff] }
  0x3d   :  { %1297 = vmatprep.subr.bf16.mxu0 %v1460_v0 }
  0x44   :  { %1300 = vmatpush1.bf16.xpose.msk.msra.mxu0 %vm1502_vm1, %v1298_v49  ;;  %v488_v49 = vshrl.u32 %v487_v48, 7  ;;  %v1330_v48 = vpack.c.bf16 %v97_v46, %v96_v45 }
  0x45   :  { %1301 = vmatprep.subr.bf16.mxu0 %v1460_v0 }
  0x46   :  { %v493_v50 = vsub.s32 1, %v488_v49 }
  0x48   :  { %v1792_v53 = vrot.slane %v426_v51, %v493_v50 }
  0x4c   :  { %1304 = vmatpush1.bf16.xpose.msk.msra.mxu0 %vm1502_vm1, %v1302_v52  ;;  %v489_v52 = vsub.s32 0, %v488_v49 }
  0x53   :  { %1225 = vmatmul.mubr.msk.f32.vlgmr.msra.gmra.mrb[0].mxu0 %vm100_vm0, %v40_v54  ;;  %v1794_v54 = vrot.slane %v426_v51, %v489_v52 }
  0x54   :  { %291 = vmatprep.mubr.f32.mxu0 %v1461_v4 }
  0x57   :  { %1226 = vmatmul.mubr.msk.f32.gmra.mrb[2].mxu0 %vm100_vm0, %v41_v56 }
  0x58   :  { %297 = vmatprep.mubr.f32.mxu0 %v1461_v4 }
  0x5b   :  { %1227 = vmatmul.mubr.msk.f32.gmra.mrb[4].mxu0 %vm100_vm0, %v42_v58 }
  0x5c   :  { %303 = vmatprep.mubr.f32.mxu0 %v1461_v4 }
  0x5f   :  { %1228 = vmatmul.mubr.msk.f32.gmra.mrb[6].mxu0 %vm100_vm0, %v43_v60 }
  0x60   :  { %309 = vmatprep.mubr.f32.mxu0 %v1461_v4 }
  0x63   :  { %1229 = vmatmul.mubr.msk.f32.gmra.mrb[8].mxu0 %vm100_vm0, %v44_v62 }
  0x64   :  { %315 = vmatprep.mubr.f32.mxu0 %v1461_v4 }
  0x67   :  { %1230 = vmatmul.mubr.msk.f32.gmra.mrb[10].mxu0 %vm100_vm0, %v45_v1 }
  0x68   :  { %321 = vmatprep.mubr.f32.mxu0 %v1461_v4 }
  0x6b   :  { %1231 = vmatmul.mubr.msk.f32.gmra.mrb[12].mxu0 %vm100_vm0, %v46_v3 }
  0x6c   :  { %327 = vmatprep.mubr.f32.mxu0 %v1461_v4 }
  0x6f   :  { %1232 = vmatmul.mubr.msk.f32.gmra.mrb[14].mxu0 %vm100_vm0, %v47_v6 }
  0x70   :  { %333 = vmatprep.mubr.f32.mxu0 %v1461_v4 }
  0x73   :  { %1233 = vmatmul.mubr.msk.f32.gmra.mrb[16].mxu0 %vm100_vm0, %v48_v8 }
  0x74   :  { %339 = vmatprep.mubr.f32.mxu0 %v1461_v4 }
  0x77   :  { %1234 = vmatmul.mubr.msk.f32.gmra.mrb[18].mxu0 %vm100_vm0, %v49_v10 }
  0x78   :  { %345 = vmatprep.mubr.f32.mxu0 %v1461_v4 }
  0x7b   :  { %1235 = vmatmul.mubr.msk.f32.gmra.mrb[20].mxu0 %vm100_vm0, %v50_v12 }
  0x7c   :  { %351 = vmatprep.mubr.f32.mxu0 %v1461_v4 }
  0x7f   :  { %1236 = vmatmul.mubr.msk.f32.gmra.mrb[22].mxu0 %vm100_vm0, %v51_v14 }
  0x80   :  { %357 = vmatprep.mubr.f32.mxu0 %v1461_v4 }
  0x83   :  { %1237 = vmatmul.mubr.msk.f32.gmra.mrb[24].mxu0 %vm100_vm0, %v52_v16  ;;  %v429_v55 = vpop.permute.xlu0 %428 }
  0x84   :  { %363 = vmatprep.mubr.f32.mxu0 %v1461_v4  ;;  %vm496_vm2 = vcmp.eq.s32.totalorder %v429_v55, %v1792_v53  ;;  %vm495_vm3 = vcmp.eq.s32.totalorder %v429_v55, %v1794_v54 }
  0x86   :  { %v435_v58 = vpop.permute.xlu1 %434 }
  0x87   :  { %1238 = vmatmul.mubr.msk.f32.gmra.mrb[26].mxu0 %vm100_vm0, %v53_v18  ;;  %v432_v62 = vpop.permute.xlu0 %431  ;;  %vm499_vm7 = vcmp.eq.s32.totalorder %v435_v58, %v1794_v54  ;;  %vm500_vm8 = vcmp.eq.s32.totalorder %v435_v58, %v1792_v53 }
  0x88   :  { %369 = vmatprep.mubr.f32.mxu0 %v1461_v4  ;;  %vm498_vm5 = vcmp.eq.s32.totalorder %v432_v62, %v1792_v53  ;;  %vm497_vm6 = vcmp.eq.s32.totalorder %v432_v62, %v1794_v54 }
  0x8a   :  { %v438_v7 = vpop.permute.xlu1 %437 }
  0x8b   :  { %1239 = vmatmul.mubr.msk.f32.gmra.mrb[28].mxu0 %vm100_vm0, %v54_v20  ;;  %vm501_vm9 = vcmp.eq.s32.totalorder %v438_v7, %v1794_v54  ;;  %vm502_vm10 = vcmp.eq.s32.totalorder %v438_v7, %v1792_v53  ;;  %v441_v21 = vpop.permute.xlu0 %440 }
  0x8c   :  { %375 = vmatprep.mubr.f32.mxu0 %v1461_v4  ;;  %vm504_vm11 = vcmp.eq.s32.totalorder %v441_v21, %v1792_v53  ;;  %vm503_vm12 = vcmp.eq.s32.totalorder %v441_v21, %v1794_v54 }
  0x8e   :  { %v444_v20 = vpop.permute.xlu1 %443 }
  0x8f   :  { %1240 = vmatmul.mubr.msk.f32.gmra.mrb[30].mxu0 %vm100_vm0, %v55_v22  ;;  %vm505_vm13 = vcmp.eq.s32.totalorder %v444_v20, %v1794_v54  ;;  %vm506_vm14 = vcmp.eq.s32.totalorder %v444_v20, %v1792_v53 }
  0x90   :  { %381 = vmatprep.mubr.f32.mxu0 %v1461_v4 }
  0x92   :  { %v450_v36 = vpop.permute.xlu1 %449 }
  0x93   :  { %1241 = vmatmul.mubr.msk.f32.gmra.mrb[32].mxu0 %vm100_vm0, %v56_v24  ;;  %vm509_vm15 = vcmp.eq.s32.totalorder %v450_v36, %v1794_v54  ;;  %vm510_vm1 = vcmp.eq.s32.totalorder %v450_v36, %v1792_v53 }
  0x94   :  { %387 = vmatprep.mubr.f32.mxu0 %v1461_v4 }
  0x96   :  { %v456_v55 = vpop.permute.xlu1 %455 }
  0x97   :  { %1242 = vmatmul.mubr.msk.f32.gmra.mrb[34].mxu0 %vm100_vm0, %v57_v26 }
  0x98   :  { %393 = vmatprep.mubr.f32.mxu0 %v1461_v4 }
  0x9b   :  { %1243 = vmatmul.mubr.msk.f32.gmra.mrb[36].mxu0 %vm100_vm0, %v58_v28  ;;  %v92_v28 = vld [vmem:[%s2211_s4 + $0x60] sm:$0xff] }
  0x9c   :  { %399 = vmatprep.mubr.f32.mxu0 %v1461_v4  ;;  %v1309_v4 = vpack.c.bf16 %v83_v35, %v82_v33  ;;  %v1324_v32 = vpack.c.bf16 %v93_v29, %v92_v28 }
  0x9e   :  { %1310 = vmatpush1.bf16.msra.mxu1 %v1309_v4 }
  0x9f   :  { %1244 = vmatmul.mubr.msk.f32.gmra.mrb[38].mxu0 %vm100_vm0, %v59_v30  ;;  %1311 = vmatprep.subr.bf16.mxu1 %v1460_v0 }
  0xa2   :  { %1313 = vmatpush1.bf16.msra.mxu1 %v1312_v38  ;;  %v95_v38 = vld [vmem:[%s2211_s4 + $0x78] sm:$0xff] }
  0xa3   :  { %1314 = vmatprep.subr.bf16.mxu1 %v1460_v0 }
  0xa6   :  { %1316 = vmatpush1.bf16.msra.mxu1 %v1315_v41  ;;  %v1327_v41 = vpack.c.bf16 %v95_v38, %v94_v37 }
  0xa7   :  { %1317 = vmatprep.subr.bf16.mxu1 %v1460_v0 }
  0xaa   :  { %1319 = vmatpush1.bf16.msra.mxu1 %v1318_v44  ;;  %v1870_v44 = vpop.permute.xlu0 %446 }
  0xab   :  { %1320 = vmatprep.subr.bf16.mxu1 %v1460_v0 }
  0xae   :  { %1322 = vmatpush1.bf16.msra.mxu1 %v1321_v47  ;;  %v453_v58 = vpop.permute.xlu0 %452 }
  0xaf   :  { %1323 = vmatprep.subr.bf16.mxu1 %v1460_v0 }
  0xb2   :  { %1325 = vmatpush1.bf16.msra.mxu1 %v1324_v32 }
  0xb3   :  { %1326 = vmatprep.subr.bf16.mxu1 %v1460_v0 }
  0xb6   :  { %1328 = vmatpush1.bf16.msra.mxu1 %v1327_v41 }
  0xb7   :  { %1329 = vmatprep.subr.bf16.mxu1 %v1460_v0 }
  0xba   :  { %1331 = vmatpush1.bf16.msra.mxu1 %v1330_v48 }
  0xbb   :  { %1332 = vmatprep.subr.bf16.mxu1 %v1460_v0 }
 0x126   :  { %v287_v56 = vpop.f32.mrb[0].mxu0 }
 0x127   :  { %v289_v57 = vpop.f32.mrb[1].mxu0  ;;  %v1800_v60 = vsel %vm495_vm3, %v287_v56, -1e+30  ;;  %v98_v56 = vld [vmem:[%s2211_s4 + $0x90] sm:$0xff]  ;;  %vm511_vm3 = vcmp.eq.s32.totalorder %v453_v58, %v1794_v54 }
 0x128   :  { %v1798_v59 = vsel %vm496_vm2, %v289_v57, -1e+30  ;;  %v99_v57 = vld [vmem:[%s2211_s4 + $0x98] sm:$0xff]  ;;  %vm512_vm2 = vcmp.eq.s32.totalorder %v453_v58, %v1792_v53 }
 0x129   :  { %v576_v61 = vsel %vm575_vm4, %v1798_v59, -inf }
 0x12a   :  { %v293_v63 = vpop.f32.mrb[2].mxu0  ;;  %v577_v1 = vmax.f32 %v1800_v60, %v576_v61 }
 0x12b   :  { %v295_v2 = vpop.f32.mrb[3].mxu0  ;;  %v1810_v5 = vsel %vm497_vm6, %v293_v63, -1e+30  ;;  %v1333_v63 = vpack.c.bf16 %v99_v57, %v98_v56  ;;  %vm514_vm6 = vcmp.eq.s32.totalorder %v456_v55, %v1792_v53 }
 0x12c   :  { %v1807_v3 = vsel %vm498_vm5, %v295_v2, -1e+30  ;;  %578 = vmax.xlane.f32.xlu0 %v577_v1  ;;  %vm513_vm5 = vcmp.eq.s32.totalorder %v456_v55, %v1794_v54 }
 0x12d   :  { %v580_v6 = vsel %vm575_vm4, %v1807_v3, -inf  ;;  %1334 = vmatpush1.bf16.msra.mxu1 %v1333_v63 }
 0x12e   :  { %v299_v8 = vpop.f32.mrb[4].mxu0  ;;  %v581_v9 = vmax.f32 %v1810_v5, %v580_v6 }
 0x12f   :  { %v301_v10 = vpop.f32.mrb[5].mxu0  ;;  %v1816_v11 = vsel %vm499_vm7, %v299_v8, -1e+30 }
 0x130   :  { %v1818_v12 = vsel %vm500_vm8, %v301_v10, -1e+30  ;;  %582 = vmax.xlane.f32.xlu1 %v581_v9 }
 0x131   :  { %v584_v13 = vsel %vm575_vm4, %v1818_v12, -inf }
 0x132   :  { %v305_v14 = vpop.f32.mrb[6].mxu0  ;;  %v585_v15 = vmax.f32 %v1816_v11, %v584_v13 }
 0x133   :  { %v307_v16 = vpop.f32.mrb[7].mxu0  ;;  %v1825_v17 = vsel %vm501_vm9, %v305_v14, -1e+30 }
 0x134   :  { %v1827_v18 = vsel %vm502_vm10, %v307_v16, -1e+30  ;;  %586 = vmax.xlane.f32.xlu1 %v585_v15  ;;  %v462_v15 = vpop.permute.xlu1 %461  ;;  %v459_v16 = vpop.permute.xlu0 %458 }
 0x135   :  { %v588_v19 = vsel %vm575_vm4, %v1827_v18, -inf  ;;  %vm516_vm7 = vcmp.eq.s32.totalorder %v459_v16, %v1792_v53  ;;  %vm515_vm8 = vcmp.eq.s32.totalorder %v459_v16, %v1794_v54  ;;  %vm517_vm9 = vcmp.eq.s32.totalorder %v462_v15, %v1794_v54 }
 0x136   :  { %v311_v22 = vpop.f32.mrb[8].mxu0  ;;  %v589_v23 = vmax.f32 %v1825_v17, %v588_v19  ;;  %vm518_vm10 = vcmp.eq.s32.totalorder %v462_v15, %v1792_v53 }
 0x137   :  { %v313_v24 = vpop.f32.mrb[9].mxu0  ;;  %v1837_v26 = vsel %vm503_vm12, %v311_v22, -1e+30  ;;  %vm508_vm12 = vcmp.eq.s32.totalorder %v1870_v44, %v1792_v53 }
 0x138   :  { %v1834_v25 = vsel %vm504_vm11, %v313_v24, -1e+30  ;;  %590 = vmax.xlane.f32.xlu1 %v589_v23 }
 0x139   :  { %v592_v27 = vsel %vm575_vm4, %v1834_v25, -inf }
 0x13a   :  { %v317_v30 = vpop.f32.mrb[10].mxu0  ;;  %v593_v31 = vmax.f32 %v1837_v26, %v592_v27 }
 0x13b   :  { %v319_v33 = vpop.f32.mrb[11].mxu0  ;;  %v1849_v34 = vsel %vm505_vm13, %v317_v30, -1e+30 }
 0x13c   :  { %v1851_v35 = vsel %vm506_vm14, %v319_v33, -1e+30  ;;  %594 = vmax.xlane.f32.xlu1 %v593_v31  ;;  %v468_v33 = vpop.permute.xlu1 %467 }
 0x13d   :  { %v596_v4 = vsel %vm575_vm4, %v1851_v35, -inf  ;;  %vm521_vm14 = vcmp.eq.s32.totalorder %v468_v33, %v1794_v54 }
 0x13e   :  { %v1862_v39 = vpop.f32.mrb[12].mxu0  ;;  %v597_v40 = vmax.f32 %v1849_v34, %v596_v4  ;;  %v465_v4 = vpop.permute.xlu0 %464 }
 0x13f   :  { %v1865_v42 = vpop.f32.mrb[13].mxu0  ;;  %vm520_vm11 = vcmp.eq.s32.totalorder %v465_v4, %v1792_v53  ;;  %vm519_vm13 = vcmp.eq.s32.totalorder %v465_v4, %v1794_v54 }
 0x140   :  { %598 = vmax.xlane.f32.xlu1 %v597_v40  ;;  %v1939_v41 = vsel %vm508_vm12, %v1865_v42, -1e+30  ;;  %v474_v56 = vpop.permute.xlu1 %473 }
 0x142   :  { %v329_v47 = vpop.f32.mrb[14].mxu0  ;;  %485 = vperm.xlu0 %1338, %v425_v43   ;;  %v471_v57 = vpop.permute.xlu0 %470 }
 0x143   :  { %v331_v49 = vpop.f32.mrb[15].mxu0  ;;  %v1881_v50 = vsel %vm509_vm15, %v329_v47, -1e+30  ;;  %vm522_vm15 = vcmp.eq.s32.totalorder %v468_v33, %v1792_v53 }
 0x144   :  { %v1883_v51 = vsel %vm510_vm1, %v331_v49, -1e+30  ;;  %vm507_vm1 = vcmp.eq.s32.totalorder %v1870_v44, %v1794_v54  ;;  %v480_v15 = vpop.permute.xlu1 %479 }
 0x145   :  { %v604_v52 = vsel %vm575_vm4, %v1883_v51, -inf  ;;  %v1958_v58 = vsel %vm507_vm1, %v1862_v39, -1e+30 }
 0x146   :  { %v335_v61 = vpop.f32.mrb[16].mxu0  ;;  %v605_v62 = vmax.f32 %v1881_v50, %v604_v52  ;;  %v600_v52 = vsel %vm575_vm4, %v1939_v41, -inf  ;;  %v477_v16 = vpop.permute.xlu0 %476 }
 0x147   :  { %v337_v1 = vpop.f32.mrb[17].mxu0  ;;  %v1900_v0 = vsel %vm511_vm3, %v335_v61, -1e+30  ;;  %vm523_vm3 = vcmp.eq.s32.totalorder %v471_v57, %v1794_v54 }
 0x148   :  { %v1897_v2 = vsel %vm512_vm2, %v337_v1, -1e+30  ;;  %606 = vmax.xlane.f32.xlu1 %v605_v62  ;;  %vm524_vm2 = vcmp.eq.s32.totalorder %v471_v57, %v1792_v53  ;;  %v601_v1 = vmax.f32 %v1958_v58, %v600_v52  ;;  %v483_v33 = vpop.permute.xlu1 %482 }
 0x149   :  { %v608_v6 = vsel %vm575_vm4, %v1897_v2, -inf  ;;  %vm532_vm12 = vcmp.eq.s32.totalorder %v483_v33, %v1792_v53 }
 0x14a   :  { %v341_v7 = vpop.f32.mrb[18].mxu0  ;;  %v609_v8 = vmax.f32 %v1900_v0, %v608_v6 }
 0x14b   :  { %v343_v9 = vpop.f32.mrb[19].mxu0  ;;  %v1906_v10 = vsel %vm513_vm5, %v341_v7, -1e+30  ;;  %vm525_vm5 = vcmp.eq.s32.totalorder %v474_v56, %v1794_v54 }
 0x14c   :  { %v1908_v13 = vsel %vm514_vm6, %v343_v9, -1e+30  ;;  %610 = vmax.xlane.f32.xlu1 %v609_v8  ;;  %vm526_vm6 = vcmp.eq.s32.totalorder %v474_v56, %v1792_v53 }
 0x14d   :  { %v612_v14 = vsel %vm575_vm4, %v1908_v13, -inf }
 0x14e   :  { %v347_v19 = vpop.f32.mrb[20].mxu0  ;;  %v613_v20 = vmax.f32 %v1906_v10, %v612_v14 }
 0x14f   :  { %v349_v21 = vpop.f32.mrb[21].mxu0  ;;  %v1918_v23 = vsel %vm515_vm8, %v347_v19, -1e+30  ;;  %vm527_vm8 = vcmp.eq.s32.totalorder %v477_v16, %v1794_v54 }
 0x150   :  { %v1915_v22 = vsel %vm516_vm7, %v349_v21, -1e+30  ;;  %614 = vmax.xlane.f32.xlu1 %v613_v20  ;;  %vm528_vm7 = vcmp.eq.s32.totalorder %v477_v16, %v1792_v53 }
 0x151   :  { %v616_v24 = vsel %vm575_vm4, %v1915_v22, -inf }
 0x152   :  { %v353_v27 = vpop.f32.mrb[22].mxu0  ;;  %v617_v28 = vmax.f32 %v1918_v23, %v616_v24 }
 0x153   :  { %v355_v29 = vpop.f32.mrb[23].mxu0  ;;  %v1924_v30 = vsel %vm517_vm9, %v353_v27, -1e+30  ;;  %vm529_vm9 = vcmp.eq.s32.totalorder %v480_v15, %v1794_v54 }
 0x154   :  { %v1926_v31 = vsel %vm518_vm10, %v355_v29, -1e+30  ;;  %618 = vmax.xlane.f32.xlu1 %v617_v28  ;;  %vm530_vm10 = vcmp.eq.s32.totalorder %v480_v15, %v1792_v53 }
 0x155   :  { %v620_v32 = vsel %vm575_vm4, %v1926_v31, -inf }
 0x156   :  { %v359_v36 = vpop.f32.mrb[24].mxu0  ;;  %v621_v37 = vmax.f32 %v1924_v30, %v620_v32 }
 0x157   :  { %v361_v38 = vpop.f32.mrb[25].mxu0  ;;  %v1941_v43 = vsel %vm519_vm13, %v359_v36, -1e+30 }
 0x158   :  { %v1935_v40 = vsel %vm520_vm11, %v361_v38, -1e+30  ;;  %622 = vmax.xlane.f32.xlu1 %v621_v37  ;;  %vm531_vm11 = vcmp.eq.s32.totalorder %v483_v33, %v1794_v54 }
 0x159   :  { %v624_v45 = vsel %vm575_vm4, %v1935_v40, -inf }
 0x15a   :  { %v365_v46 = vpop.f32.mrb[26].mxu0  ;;  %v625_v47 = vmax.f32 %v1941_v43, %v624_v45 }
 0x15b   :  { %v367_v48 = vpop.f32.mrb[27].mxu0  ;;  %v1947_v49 = vsel %vm521_vm14, %v365_v46, -1e+30 }
 0x15c   :  { %v1951_v55 = vsel %vm522_vm15, %v367_v48, -1e+30  ;;  %626 = vmax.xlane.f32.xlu1 %v625_v47 }
 0x15d   :  { %v628_v42 = vsel %vm575_vm4, %v1951_v55, -inf }
 0x15e   :  { %v371_v61 = vpop.f32.mrb[28].mxu0  ;;  %v629_v62 = vmax.f32 %v1947_v49, %v628_v42 }
 0x15f   :  { %v373_v63 = vpop.f32.mrb[29].mxu0  ;;  %v1967_v44 = vsel %vm523_vm3, %v371_v61, -1e+30 }
 0x160   :  { %v1964_v6 = vsel %vm524_vm2, %v373_v63, -1e+30  ;;  %630 = vmax.xlane.f32.xlu1 %v629_v62 }
 0x161   :  { %v632_v39 = vsel %vm575_vm4, %v1964_v6, -inf  ;;  %602 = vmax.xlane.f32.xlu0 %v601_v1 }
 0x162   :  { %v377_v7 = vpop.f32.mrb[30].mxu0  ;;  %v633_v8 = vmax.f32 %v1967_v44, %v632_v39 }
 0x163   :  { %v379_v9 = vpop.f32.mrb[31].mxu0  ;;  %v1973_v14 = vsel %vm525_vm5, %v377_v7, -1e+30 }
 0x164   :  { %v1975_v19 = vsel %vm526_vm6, %v379_v9, -1e+30 }
 0x165   :  { %v636_v20 = vsel %vm575_vm4, %v1975_v19, -inf  ;;  %634 = vmax.xlane.f32.xlu0 %v633_v8 }
 0x166   :  { %v383_v21 = vpop.f32.mrb[32].mxu0  ;;  %v637_v24 = vmax.f32 %v1973_v14, %v636_v20 }
 0x167   :  { %v385_v27 = vpop.f32.mrb[33].mxu0  ;;  %v1985_v29 = vsel %vm527_vm8, %v383_v21, -1e+30 }
 0x168   :  { %v1982_v28 = vsel %vm528_vm7, %v385_v27, -1e+30  ;;  %638 = vmax.xlane.f32.xlu1 %v637_v24 }
 0x169   :  { %v640_v32 = vsel %vm575_vm4, %v1982_v28, -inf }
 0x16a   :  { %v389_v4 = vpop.f32.mrb[34].mxu0  ;;  %v641_v36 = vmax.f32 %v1985_v29, %v640_v32 }
 0x16b   :  { %v391_v37 = vpop.f32.mrb[35].mxu0  ;;  %v1991_v38 = vsel %vm529_vm9, %v389_v4, -1e+30 }
 0x16c   :  { %v1993_v45 = vsel %vm530_vm10, %v391_v37, -1e+30  ;;  %642 = vmax.xlane.f32.xlu0 %v641_v36 }
 0x16d   :  { %v644_v46 = vsel %vm575_vm4, %v1993_v45, -inf }
 0x16e   :  { %v395_v47 = vpop.f32.mrb[36].mxu0  ;;  %v645_v48 = vmax.f32 %v1991_v38, %v644_v46 }
 0x16f   :  { %v397_v52 = vpop.f32.mrb[37].mxu0  ;;  %v2000_v42 = vsel %vm531_vm11, %v395_v47, -1e+30 }
 0x170   :  { %v2002_v56 = vsel %vm532_vm12, %v397_v52, -1e+30  ;;  %646 = vmax.xlane.f32.xlu1 %v645_v48 }
 0x171   :  { %v648_v57 = vsel %vm575_vm4, %v2002_v56, -inf }
 0x172   :  { %v649_v61 = vmax.f32 %v2000_v42, %v648_v57  ;;  %v401_v62 = vpop.f32.mrb[38].mxu0 }
 0x173   :  { %v403_v63 = vpop.f32.mrb[39].mxu0 }
 0x174   :  { %650 = vmax.xlane.f32.xlu0 %v649_v61 }
 0x1b9   :  { %v579_v1 = vpop.xlane.xlu0 %578 }
 0x1ba   :  { %v656_v39 = vsub.f32 %v1800_v60, %v579_v1  ;;  %v657_v7 = vsub.f32 %v1798_v59, %v579_v1 }
 0x1bc   :  { %v696_v8 = vmul.f32 1.442695, %v656_v39  ;;  %v698_v9 = vmul.f32 1.442695, %v657_v7 }
 0x1bd   :  { %v583_v15 = vpop.xlane.xlu1 %582 }
 0x1be   :  { %1340 = vpow2.f32 %v696_v8  ;;  %v658_v16 = vsub.f32 %v1810_v5, %v583_v15  ;;  %v659_v20 = vsub.f32 %v1807_v3, %v583_v15 }
 0x1bf   :  { %1342 = vpow2.f32 %v698_v9 }
 0x1c0   :  { %v700_v21 = vmul.f32 1.442695, %v658_v16  ;;  %v702_v24 = vmul.f32 1.442695, %v659_v20 }
 0x1c1   :  { %v587_v27 = vpop.xlane.xlu1 %586  ;;  %v486_v32 = vpop.permute.xlu0 %485 }
 0x1c2   :  { %1344 = vpow2.f32 %v700_v21  ;;  %v660_v33 = vsub.f32 %v1816_v11, %v587_v27  ;;  %v661_v60 = vsub.f32 %v1818_v12, %v587_v27  ;;  %vm533_vm13 = vcmp.eq.s32.totalorder %v486_v32, %v1794_v54 }
 0x1c3   :  { %1346 = vpow2.f32 %v702_v24  ;;  %vm534_vm14 = vcmp.eq.s32.totalorder %v486_v32, %v1792_v53  ;;  %v2015_v59 = vsel %vm533_vm13, %v401_v62, -1e+30 }
 0x1c4   :  { %v704_v5 = vmul.f32 1.442695, %v660_v33  ;;  %v706_v4 = vmul.f32 1.442695, %v661_v60  ;;  %v2017_v3 = vsel %vm534_vm14, %v403_v63, -1e+30 }
 0x1c5   :  { %v591_v36 = vpop.xlane.xlu1 %590  ;;  %v652_v37 = vsel %vm575_vm4, %v2017_v3, -inf }
 0x1c6   :  { %1348 = vpow2.f32 %v704_v5  ;;  %v662_v11 = vsub.f32 %v1825_v17, %v591_v36  ;;  %v663_v12 = vsub.f32 %v1827_v18, %v591_v36  ;;  %v653_v54 = vmax.f32 %v2015_v59, %v652_v37 }
 0x1c7   :  { %1350 = vpow2.f32 %v706_v4 }
 0x1c8   :  { %v1341_v46 = vpop.eup %1340  ;;  %v708_v53 = vmul.f32 1.442695, %v662_v11  ;;  %v710_v47 = vmul.f32 1.442695, %v663_v12  ;;  %654 = vmax.xlane.f32.xlu1 %v653_v54 }
 0x1c9   :  { %v1343_v48 = vpop.eup %1342  ;;  %v595_v52 = vpop.xlane.xlu1 %594 }
 0x1ca   :  { %1352 = vpow2.f32 %v708_v53  ;;  %v664_v57 = vsub.f32 %v1837_v26, %v595_v52  ;;  %v665_v61 = vsub.f32 %v1834_v25, %v595_v52  ;;  %1245 = vmatprep.mubr.msk.f32.mxu1 %vm575_vm4, %v1343_v48  ;;  %v776_v17 = vsel %vm575_vm4, %v1343_v48, 0.0 }
 0x1cb   :  { %1354 = vpow2.f32 %v710_v47  ;;  %981 = vmatmul.mubr.f32.vlgmr.msra.gmra.mrb[0].mxu1 %v1341_v46  ;;  %v777_v18 = vadd.f32 %v1341_v46, %v776_v17 }
 0x1cc   :  { %v1345_v62 = vpop.eup %1344  ;;  %v712_v63 = vmul.f32 1.442695, %v664_v57  ;;  %v714_v1 = vmul.f32 1.442695, %v665_v61 }
 0x1cd   :  { %v1347_v39 = vpop.eup %1346  ;;  %778 = vadd.xlane.f32.xlu0 %v777_v18  ;;  %v599_v7 = vpop.xlane.xlu1 %598 }
 0x1ce   :  { %1356 = vpow2.f32 %v712_v63  ;;  %v666_v8 = vsub.f32 %v1849_v34, %v599_v7  ;;  %v667_v26 = vsub.f32 %v1851_v35, %v599_v7  ;;  %1246 = vmatprep.mubr.msk.f32.mxu1 %vm575_vm4, %v1347_v39  ;;  %v780_v25 = vsel %vm575_vm4, %v1347_v39, 0.0 }
 0x1cf   :  { %1358 = vpow2.f32 %v714_v1  ;;  %986 = vmatmul.mubr.f32.gmra.mrb[2].mxu1 %v1345_v62  ;;  %v781_v9 = vadd.f32 %v1345_v62, %v780_v25 }
 0x1d0   :  { %v1349_v15 = vpop.eup %1348  ;;  %v716_v16 = vmul.f32 1.442695, %v666_v8  ;;  %v718_v20 = vmul.f32 1.442695, %v667_v26 }
 0x1d1   :  { %v1351_v21 = vpop.eup %1350  ;;  %782 = vadd.xlane.f32.xlu1 %v781_v9 }
 0x1d2   :  { %1360 = vpow2.f32 %v716_v16  ;;  %1247 = vmatprep.mubr.msk.f32.mxu1 %vm575_vm4, %v1351_v21  ;;  %v784_v24 = vsel %vm575_vm4, %v1351_v21, 0.0 }
 0x1d3   :  { %1362 = vpow2.f32 %v718_v20  ;;  %991 = vmatmul.mubr.f32.gmra.mrb[4].mxu1 %v1349_v15  ;;  %v785_v34 = vadd.f32 %v1349_v15, %v784_v24 }
 0x1d4   :  { %v1353_v35 = vpop.eup %1352 }
 0x1d5   :  { %v1355_v27 = vpop.eup %1354  ;;  %786 = vadd.xlane.f32.xlu0 %v785_v34  ;;  %v607_v32 = vpop.xlane.xlu1 %606 }
 0x1d6   :  { %v670_v33 = vsub.f32 %v1881_v50, %v607_v32  ;;  %v671_v60 = vsub.f32 %v1883_v51, %v607_v32  ;;  %1248 = vmatprep.mubr.msk.f32.mxu1 %vm575_vm4, %v1355_v27  ;;  %v788_v5 = vsel %vm575_vm4, %v1355_v27, 0.0 }
 0x1d7   :  { %996 = vmatmul.mubr.f32.gmra.mrb[6].mxu1 %v1353_v35  ;;  %v789_v4 = vadd.f32 %v1353_v35, %v788_v5 }
 0x1d8   :  { %v1357_v36 = vpop.eup %1356  ;;  %v724_v37 = vmul.f32 1.442695, %v670_v33  ;;  %v726_v11 = vmul.f32 1.442695, %v671_v60 }
 0x1d9   :  { %v1359_v12 = vpop.eup %1358  ;;  %790 = vadd.xlane.f32.xlu1 %v789_v4  ;;  %v611_v54 = vpop.xlane.xlu1 %610 }
 0x1da   :  { %1364 = vpow2.f32 %v724_v37  ;;  %1249 = vmatprep.mubr.msk.f32.mxu1 %vm575_vm4, %v1359_v12  ;;  %v792_v46 = vsel %vm575_vm4, %v1359_v12, 0.0  ;;  %v673_v9 = vsub.f32 %v1897_v2, %v611_v54  ;;  %v672_v33 = vsub.f32 %v1900_v0, %v611_v54 }
 0x1db   :  { %1366 = vpow2.f32 %v726_v11  ;;  %1001 = vmatmul.mubr.f32.gmra.mrb[8].mxu1 %v1357_v36  ;;  %v793_v50 = vadd.f32 %v1357_v36, %v792_v46 }
 0x1dc   :  { %v1361_v51 = vpop.eup %1360  ;;  %v728_v37 = vmul.f32 1.442695, %v672_v33 }
 0x1dd   :  { %v1363_v53 = vpop.eup %1362  ;;  %794 = vadd.xlane.f32.xlu0 %v793_v50  ;;  %v615_v47 = vpop.xlane.xlu1 %614 }
 0x1de   :  { %v674_v48 = vsub.f32 %v1906_v10, %v615_v47  ;;  %v675_v52 = vsub.f32 %v1908_v13, %v615_v47  ;;  %1250 = vmatprep.mubr.msk.f32.mxu1 %vm575_vm4, %v1363_v53  ;;  %v796_v57 = vsel %vm575_vm4, %v1363_v53, 0.0 }
 0x1df   :  { %1006 = vmatmul.mubr.f32.gmra.mrb[10].mxu1 %v1361_v51  ;;  %v797_v61 = vadd.f32 %v1361_v51, %v796_v57 }
 0x1e0   :  { %v732_v17 = vmul.f32 1.442695, %v674_v48  ;;  %v734_v18 = vmul.f32 1.442695, %v675_v52 }
 0x1e1   :  { %798 = vadd.xlane.f32.xlu1 %v797_v61  ;;  %v619_v62 = vpop.xlane.xlu1 %618 }
 0x1e2   :  { %1368 = vpow2.f32 %v732_v17  ;;  %v677_v4 = vsub.f32 %v1915_v22, %v619_v62 }
 0x1e3   :  { %1370 = vpow2.f32 %v734_v18 }
 0x1e4   :  { %v2044_v63 = vpop.eup %1364  ;;  %v738_v11 = vmul.f32 1.442695, %v677_v4 }
 0x1e5   :  { %v2046_v1 = vpop.eup %1366  ;;  %v623_v39 = vpop.xlane.xlu1 %622 }
 0x1e6   :  { %v678_v10 = vsub.f32 %v1924_v30, %v623_v39  ;;  %v679_v13 = vsub.f32 %v1926_v31, %v623_v39  ;;  %v804_v7 = vsel %vm575_vm4, %v2046_v1, 0.0  ;;  %v730_v30 = vmul.f32 1.442695, %v673_v9 }
 0x1e7   :  { %v805_v8 = vadd.f32 %v2044_v63, %v804_v7 }
 0x1e8   :  { %v740_v26 = vmul.f32 1.442695, %v678_v10  ;;  %v742_v25 = vmul.f32 1.442695, %v679_v13 }
 0x1e9   :  { %806 = vadd.xlane.f32.xlu1 %v805_v8  ;;  %v627_v15 = vpop.xlane.xlu1 %626 }
 0x1ea   :  { %1372 = vpow2.f32 %v740_v26  ;;  %v681_v0 = vsub.f32 %v1935_v40, %v627_v15  ;;  %v680_v51 = vsub.f32 %v1941_v43, %v627_v15 }
 0x1eb   :  { %1374 = vpow2.f32 %v742_v25 }
 0x1ec   :  { %v2054_v16 = vpop.eup %1368  ;;  %1376 = vpow2.f32 %v730_v30  ;;  %v746_v40 = vmul.f32 1.442695, %v681_v0 }
 0x1ed   :  { %v2056_v20 = vpop.eup %1370  ;;  %v631_v21 = vpop.xlane.xlu1 %630 }
 0x1ee   :  { %v682_v31 = vsub.f32 %v1947_v49, %v631_v21  ;;  %v683_v24 = vsub.f32 %v1951_v55, %v631_v21  ;;  %v603_v34 = vpop.xlane.xlu0 %602  ;;  %v812_v35 = vsel %vm575_vm4, %v2056_v20, 0.0 }
 0x1ef   :  { %v668_v2 = vsub.f32 %v1958_v58, %v603_v34  ;;  %v669_v27 = vsub.f32 %v1939_v41, %v603_v34  ;;  %v813_v32 = vadd.f32 %v2054_v16, %v812_v35  ;;  %v676_v58 = vsub.f32 %v1918_v23, %v619_v62 }
 0x1f0   :  { %v748_v60 = vmul.f32 1.442695, %v682_v31  ;;  %v750_v5 = vmul.f32 1.442695, %v683_v24 }
 0x1f1   :  { %v720_v49 = vmul.f32 1.442695, %v668_v2  ;;  %v722_v36 = vmul.f32 1.442695, %v669_v27  ;;  %814 = vadd.xlane.f32.xlu1 %v813_v32  ;;  %v736_v53 = vmul.f32 1.442695, %v676_v58 }
 0x1f2   :  { %1378 = vpow2.f32 %v748_v60  ;;  %v635_v54 = vpop.xlane.xlu0 %634 }
 0x1f3   :  { %1380 = vpow2.f32 %v750_v5  ;;  %v685_v52 = vsub.f32 %v1964_v6, %v635_v54  ;;  %v684_v61 = vsub.f32 %v1967_v44, %v635_v54 }
 0x1f4   :  { %v2067_v55 = vpop.eup %1372  ;;  %1382 = vpow2.f32 %v720_v49 }
 0x1f5   :  { %v2070_v41 = vpop.eup %1374  ;;  %1384 = vpow2.f32 %v722_v36  ;;  %v639_v12 = vpop.xlane.xlu1 %638  ;;  %v754_v18 = vmul.f32 1.442695, %v685_v52  ;;  %v752_v8 = vmul.f32 1.442695, %v684_v61 }
 0x1f6   :  { %v686_v22 = vsub.f32 %v1973_v14, %v639_v12  ;;  %v687_v46 = vsub.f32 %v1975_v19, %v639_v12  ;;  %v820_v50 = vsel %vm575_vm4, %v2070_v41, 0.0  ;;  %1386 = vpow2.f32 %v728_v37  ;;  %v1377_v57 = vpop.eup %1376 }
 0x1f7   :  { %v821_v23 = vadd.f32 %v2067_v55, %v820_v50  ;;  %1388 = vpow2.f32 %v738_v11  ;;  %v744_v19 = vmul.f32 1.442695, %v680_v51 }
 0x1f8   :  { %v756_v47 = vmul.f32 1.442695, %v686_v22  ;;  %v758_v48 = vmul.f32 1.442695, %v687_v46 }
 0x1f9   :  { %822 = vadd.xlane.f32.xlu1 %v821_v23  ;;  %v643_v14 = vpop.xlane.xlu0 %642 }
 0x1fa   :  { %1390 = vpow2.f32 %v756_v47  ;;  %v689_v62 = vsub.f32 %v1982_v28, %v643_v14  ;;  %v688_v25 = vsub.f32 %v1985_v29, %v643_v14  ;;  %v808_v29 = vsel %vm575_vm4, %v1377_v57, 0.0 }
 0x1fb   :  { %1392 = vpow2.f32 %v758_v48 }
 0x1fc   :  { %v2081_v17 = vpop.eup %1378  ;;  %1394 = vpow2.f32 %v736_v53  ;;  %v760_v35 = vmul.f32 1.442695, %v688_v25 }
 0x1fd   :  { %v2083_v43 = vpop.eup %1380  ;;  %1396 = vpow2.f32 %v746_v40  ;;  %v647_v39 = vpop.xlane.xlu1 %646 }
 0x1fe   :  { %v1383_v10 = vpop.eup %1382  ;;  %v690_v6 = vsub.f32 %v1991_v38, %v647_v39  ;;  %v691_v13 = vsub.f32 %v1993_v45, %v647_v39  ;;  %v828_v7 = vsel %vm575_vm4, %v2083_v43, 0.0  ;;  %1398 = vpow2.f32 %v744_v19 }
 0x1ff   :  { %v1385_v44 = vpop.eup %1384  ;;  %v829_v26 = vadd.f32 %v2081_v17, %v828_v7  ;;  %1400 = vpow2.f32 %v754_v18  ;;  %v762_v38 = vmul.f32 1.442695, %v689_v62 }
 0x200   :  { %v764_v9 = vmul.f32 1.442695, %v690_v6  ;;  %v766_v15 = vmul.f32 1.442695, %v691_v13  ;;  %1251 = vmatprep.mubr.msk.f32.mxu1 %vm575_vm4, %v1385_v44  ;;  %v800_v28 = vsel %vm575_vm4, %v1385_v44, 0.0  ;;  %v1387_v21 = vpop.eup %1386 }
 0x201   :  { %1011 = vmatmul.mubr.f32.gmra.mrb[12].mxu1 %v1383_v10  ;;  %830 = vadd.xlane.f32.xlu1 %v829_v26  ;;  %v801_v45 = vadd.f32 %v1383_v10, %v800_v28  ;;  %v651_v30 = vpop.xlane.xlu0 %650  ;;  %v1389_v24 = vpop.eup %1388  ;;  %v809_v33 = vadd.f32 %v1387_v21, %v808_v29 }
 0x202   :  { %1402 = vpow2.f32 %v764_v9  ;;  %1252 = vmatprep.mubr.msk.f32.mxu1 %vm575_vm4, %v2046_v1  ;;  %v693_v31 = vsub.f32 %v2002_v56, %v651_v30  ;;  %v692_v2 = vsub.f32 %v2000_v42, %v651_v30  ;;  %v816_v1 = vsel %vm575_vm4, %v1389_v24, 0.0 }
 0x203   :  { %1404 = vpow2.f32 %v766_v15  ;;  %802 = vadd.xlane.f32.xlu0 %v801_v45 }
 0x204   :  { %v1391_v34 = vpop.eup %1390  ;;  %1406 = vpow2.f32 %v752_v8  ;;  %v770_v32 = vmul.f32 1.442695, %v693_v31  ;;  %v768_v49 = vmul.f32 1.442695, %v692_v2 }
 0x205   :  { %v1393_v27 = vpop.eup %1392  ;;  %1408 = vpow2.f32 %v762_v38  ;;  %1016 = vmatmul.mubr.f32.gmra.mrb[14].mxu1 %v2044_v63 }
 0x206   :  { %v1395_v60 = vpop.eup %1394  ;;  %1253 = vmatprep.mubr.msk.f32.mxu1 %vm575_vm4, %v1377_v57  ;;  %v836_v56 = vsel %vm575_vm4, %v1393_v27, 0.0  ;;  %1410 = vpow2.f32 %v760_v35 }
 0x207   :  { %v1397_v5 = vpop.eup %1396  ;;  %810 = vadd.xlane.f32.xlu0 %v809_v33  ;;  %v837_v4 = vadd.f32 %v1391_v34, %v836_v56  ;;  %1412 = vpow2.f32 %v770_v32  ;;  %v817_v42 = vadd.f32 %v1395_v60, %v816_v1 }
 0x208   :  { %v1399_v36 = vpop.eup %1398  ;;  %v824_v63 = vsel %vm575_vm4, %v1397_v5, 0.0  ;;  %1414 = vpow2.f32 %v768_v49 }
 0x209   :  { %1021 = vmatmul.mubr.f32.gmra.mrb[16].mxu1 %v1387_v21  ;;  %838 = vadd.xlane.f32.xlu1 %v837_v4  ;;  %v1401_v37 = vpop.eup %1400  ;;  %v825_v0 = vadd.f32 %v1399_v36, %v824_v63 }
 0x20a   :  { %1254 = vmatprep.mubr.msk.f32.mxu1 %vm575_vm4, %v2056_v20  ;;  %v832_v22 = vsel %vm575_vm4, %v1401_v37, 0.0 }
 0x20b   :  { %818 = vadd.xlane.f32.xlu0 %v817_v42 }
 0x20c   :  { %v1403_v58 = vpop.eup %1402 }
 0x20d   :  { %v1405_v11 = vpop.eup %1404  ;;  %1026 = vmatmul.mubr.f32.gmra.mrb[18].mxu1 %v2054_v16 }
 0x20e   :  { %v1407_v12 = vpop.eup %1406  ;;  %1255 = vmatprep.mubr.msk.f32.mxu1 %vm575_vm4, %v1389_v24  ;;  %v844_v54 = vsel %vm575_vm4, %v1405_v11, 0.0 }
 0x20f   :  { %v1409_v46 = vpop.eup %1408  ;;  %826 = vadd.xlane.f32.xlu0 %v825_v0  ;;  %v845_v20 = vadd.f32 %v1403_v58, %v844_v54  ;;  %v833_v50 = vadd.f32 %v1407_v12, %v832_v22 }
 0x210   :  { %v1411_v51 = vpop.eup %1410  ;;  %v840_v16 = vsel %vm575_vm4, %v1409_v46, 0.0 }
 0x211   :  { %1031 = vmatmul.mubr.f32.gmra.mrb[20].mxu1 %v1395_v60  ;;  %846 = vadd.xlane.f32.xlu1 %v845_v20  ;;  %v1413_v23 = vpop.eup %1412  ;;  %v841_v53 = vadd.f32 %v1411_v51, %v840_v16 }
 0x212   :  { %1256 = vmatprep.mubr.msk.f32.mxu1 %vm575_vm4, %v2070_v41  ;;  %v1415_v47 = vpop.eup %1414  ;;  %v848_v48 = vsel %vm575_vm4, %v1413_v23, 0.0 }
 0x213   :  { %834 = vadd.xlane.f32.xlu0 %v833_v50  ;;  %v849_v40 = vadd.f32 %v1415_v47, %v848_v48 }
 0x215   :  { %1036 = vmatmul.mubr.f32.gmra.mrb[22].mxu1 %v2067_v55 }
 0x216   :  { %1257 = vmatprep.mubr.msk.f32.mxu1 %vm575_vm4, %v1397_v5 }
 0x217   :  { %842 = vadd.xlane.f32.xlu0 %v841_v53 }
 0x219   :  { %1041 = vmatmul.mubr.f32.gmra.mrb[24].mxu1 %v1399_v36 }
 0x21a   :  { %1258 = vmatprep.mubr.msk.f32.mxu1 %vm575_vm4, %v2083_v43 }
 0x21b   :  { %850 = vadd.xlane.f32.xlu0 %v849_v40 }
 0x21d   :  { %1046 = vmatmul.mubr.f32.gmra.mrb[26].mxu1 %v2081_v17 }
 0x21e   :  { %1259 = vmatprep.mubr.msk.f32.mxu1 %vm575_vm4, %v1401_v37 }
 0x221   :  { %1051 = vmatmul.mubr.f32.gmra.mrb[28].mxu1 %v1407_v12 }
 0x222   :  { %1260 = vmatprep.mubr.msk.f32.mxu1 %vm575_vm4, %v1393_v27 }
 0x225   :  { %1056 = vmatmul.mubr.f32.gmra.mrb[30].mxu1 %v1391_v34 }
 0x226   :  { %1261 = vmatprep.mubr.msk.f32.mxu1 %vm575_vm4, %v1409_v46 }
 0x229   :  { %1061 = vmatmul.mubr.f32.gmra.mrb[32].mxu1 %v1411_v51 }
 0x22a   :  { %1262 = vmatprep.mubr.msk.f32.mxu1 %vm575_vm4, %v1405_v11 }
 0x22d   :  { %1066 = vmatmul.mubr.f32.gmra.mrb[34].mxu1 %v1403_v58 }
 0x22e   :  { %1263 = vmatprep.mubr.msk.f32.mxu1 %vm575_vm4, %v1413_v23 }
 0x231   :  { %1071 = vmatmul.mubr.f32.gmra.mrb[36].mxu1 %v1415_v47 }
 0x255   :  { %v655_v55 = vpop.xlane.xlu1 %654 }
 0x256   :  { %v694_v41 = vsub.f32 %v2015_v59, %v655_v55  ;;  %v695_v52 = vsub.f32 %v2017_v3, %v655_v55 }
 0x258   :  { %v772_v14 = vmul.f32 1.442695, %v694_v41  ;;  %v774_v57 = vmul.f32 1.442695, %v695_v52 }
 0x25a   :  { %1416 = vpow2.f32 %v772_v14  ;;  %v779_v18 = vpop.xlane.xlu0 %778 }
 0x25b   :  { %1418 = vpow2.f32 %v774_v57 }
 0x25c   :  { %1420 = vrcp.f32 %v779_v18 }
 0x25e   :  { %v783_v62 = vpop.xlane.xlu1 %782 }
 0x25f   :  { %1422 = vrcp.f32 %v783_v62 }
 0x262   :  { %v787_v59 = vpop.xlane.xlu0 %786 }
 0x263   :  { %1424 = vrcp.f32 %v787_v59 }
 0x264   :  { %v1417_v19 = vpop.eup %1416 }
 0x265   :  { %v1419_v61 = vpop.eup %1418 }
 0x266   :  { %1264 = vmatprep.mubr.msk.f32.mxu1 %vm575_vm4, %v1419_v61  ;;  %v852_v17 = vsel %vm575_vm4, %v1419_v61, 0.0  ;;  %v791_v3 = vpop.xlane.xlu1 %790  ;;  %v1421_v39 = vpop.eup %1420 }
 0x267   :  { %1076 = vmatmul.mubr.f32.gmra.mrb[38].mxu1 %v1417_v19  ;;  %v853_v43 = vadd.f32 %v1417_v19, %v852_v17  ;;  %1426 = vrcp.f32 %v791_v3  ;;  %v1101_v10 = vmul.f32 %v1421_v39, %v779_v18 }
 0x269   :  { %854 = vadd.xlane.f32.xlu1 %v853_v43  ;;  %v1423_v13 = vpop.eup %1422  ;;  %v1121_v7 = vsub.f32 2.0, %v1101_v10 }
 0x26a   :  { %v795_v6 = vpop.xlane.xlu0 %794  ;;  %v1102_v44 = vmul.f32 %v1423_v13, %v783_v62 }
 0x26b   :  { %1428 = vrcp.f32 %v795_v6  ;;  %v1141_v15 = vmul.f32 %v1421_v39, %v1121_v7 }
 0x26c   :  { %v1122_v25 = vsub.f32 2.0, %v1102_v44 }
 0x26d   :  { %v1425_v26 = vpop.eup %1424 }
 0x26e   :  { %v799_v8 = vpop.xlane.xlu1 %798  ;;  %v1103_v9 = vmul.f32 %v1425_v26, %v787_v59  ;;  %v1142_v29 = vmul.f32 %v1423_v13, %v1122_v25 }
 0x26f   :  { %1430 = vrcp.f32 %v799_v8 }
 0x270   :  { %v1123_v21 = vsub.f32 2.0, %v1103_v9 }
 0x271   :  { %v1427_v28 = vpop.eup %1426 }
 0x272   :  { %v1104_v31 = vmul.f32 %v1427_v28, %v791_v3  ;;  %v1143_v33 = vmul.f32 %v1425_v26, %v1123_v21 }
 0x274   :  { %v1124_v27 = vsub.f32 2.0, %v1104_v31 }
 0x275   :  { %v1429_v24 = vpop.eup %1428 }
 0x276   :  { %v1105_v32 = vmul.f32 %v1429_v24, %v795_v6  ;;  %v1144_v36 = vmul.f32 %v1427_v28, %v1124_v27  ;;  %v807_v16 = vpop.xlane.xlu1 %806 }
 0x278   :  { %v1125_v4 = vsub.f32 2.0, %v1105_v32 }
 0x279   :  { %v1431_v60 = vpop.eup %1430 }
 0x27a   :  { %v1106_v49 = vmul.f32 %v1431_v60, %v799_v8  ;;  %v1145_v11 = vmul.f32 %v1429_v24, %v1125_v4 }
 0x27c   :  { %v1126_v58 = vsub.f32 2.0, %v1106_v49 }
 0x27e   :  { %v1146_v22 = vmul.f32 %v1431_v60, %v1126_v58  ;;  %v815_v53 = vpop.xlane.xlu1 %814 }
 0x286   :  { %v823_v52 = vpop.xlane.xlu1 %822 }
 0x28e   :  { %v831_v10 = vpop.xlane.xlu1 %830 }
 0x290   :  { %v803_v51 = vpop.xlane.xlu0 %802 }
 0x291   :  { %1432 = vrcp.f32 %v803_v51 }
 0x292   :  { %1434 = vrcp.f32 %v807_v16 }
 0x294   :  { %v811_v23 = vpop.xlane.xlu0 %810 }
 0x295   :  { %1436 = vrcp.f32 %v811_v23 }
 0x296   :  { %1438 = vrcp.f32 %v815_v53 }
 0x298   :  { %v819_v40 = vpop.xlane.xlu0 %818 }
 0x299   :  { %1440 = vrcp.f32 %v819_v40 }
 0x29a   :  { %1442 = vrcp.f32 %v823_v52 }
 0x29b   :  { %v1433_v47 = vpop.eup %1432 }
 0x29c   :  { %v1107_v48 = vmul.f32 %v1433_v47, %v803_v51  ;;  %v1435_v55 = vpop.eup %1434  ;;  %v827_v17 = vpop.xlane.xlu0 %826 }
 0x29d   :  { %v1108_v41 = vmul.f32 %v1435_v55, %v807_v16  ;;  %1444 = vrcp.f32 %v827_v17 }
 0x29e   :  { %v982_v38 = vpop.f32.mrb[0].mxu1  ;;  %v1127_v14 = vsub.f32 2.0, %v1107_v48  ;;  %1446 = vrcp.f32 %v831_v10 }
 0x29f   :  { %v1161_v45 = vmul.f32 %v1141_v15, %v982_v38  ;;  %v984_v30 = vpop.f32.mrb[1].mxu1  ;;  %v1437_v57 = vpop.eup %1436  ;;  %v1128_v19 = vsub.f32 2.0, %v1108_v41 }
 0x2a0   :  { %v1109_v61 = vmul.f32 %v1437_v57, %v811_v23  ;;  %v1147_v43 = vmul.f32 %v1433_v47, %v1127_v14  ;;  %v1439_v18 = vpop.eup %1438  ;;  %v835_v15 = vpop.xlane.xlu0 %834 }
 0x2a1   :  { %1181 = vst.msk [vmem:[%s2213_s5] sm:$0xff] %vm100_vm0, %v1161_v45  ;;  %v1110_v39 = vmul.f32 %v1439_v18, %v815_v53  ;;  %v1148_v13 = vmul.f32 %v1435_v55, %v1128_v19  ;;  %1448 = vrcp.f32 %v835_v15 }
 0x2a2   :  { %v987_v34 = vpop.f32.mrb[2].mxu1  ;;  %v1129_v6 = vsub.f32 2.0, %v1109_v61 }
 0x2a3   :  { %v1162_v35 = vmul.f32 %v1142_v29, %v987_v34  ;;  %v989_v2 = vpop.f32.mrb[3].mxu1  ;;  %v1441_v7 = vpop.eup %1440  ;;  %v1130_v25 = vsub.f32 2.0, %v1110_v39 }
 0x2a4   :  { %v1111_v9 = vmul.f32 %v1441_v7, %v819_v40  ;;  %v1149_v28 = vmul.f32 %v1437_v57, %v1129_v6  ;;  %v1443_v38 = vpop.eup %1442  ;;  %v839_v29 = vpop.xlane.xlu1 %838 }
 0x2a5   :  { %1182 = vst.msk [vmem:[%s2213_s5 + $0x8] sm:$0xff] %vm100_vm0, %v1162_v35  ;;  %v1112_v31 = vmul.f32 %v1443_v38, %v823_v52  ;;  %v1150_v34 = vmul.f32 %v1439_v18, %v1130_v25  ;;  %1450 = vrcp.f32 %v839_v29 }
 0x2a6   :  { %v992_v56 = vpop.f32.mrb[4].mxu1  ;;  %v1131_v24 = vsub.f32 2.0, %v1111_v9 }
 0x2a7   :  { %v1163_v1 = vmul.f32 %v1143_v33, %v992_v56  ;;  %v994_v5 = vpop.f32.mrb[5].mxu1  ;;  %v1445_v35 = vpop.eup %1444  ;;  %v1132_v33 = vsub.f32 2.0, %v1112_v31 }
 0x2a8   :  { %v1113_v60 = vmul.f32 %v1445_v35, %v827_v17  ;;  %v843_v56 = vpop.xlane.xlu0 %842  ;;  %v1447_v5 = vpop.eup %1446 }
 0x2a9   :  { %1183 = vst.msk [vmem:[%s2213_s5 + $0x10] sm:$0xff] %vm100_vm0, %v1163_v1  ;;  %v1151_v1 = vmul.f32 %v1441_v7, %v1131_v24  ;;  %1452 = vrcp.f32 %v843_v56  ;;  %v1152_v58 = vmul.f32 %v1443_v38, %v1132_v33 }
 0x2aa   :  { %v997_v42 = vpop.f32.mrb[6].mxu1 }
 0x2ab   :  { %v1164_v63 = vmul.f32 %v1144_v36, %v997_v42  ;;  %v999_v37 = vpop.f32.mrb[7].mxu1  ;;  %v1114_v42 = vmul.f32 %v1447_v5, %v831_v10 }
 0x2ac   :  { %v847_v37 = vpop.xlane.xlu1 %846 }
 0x2ad   :  { %1184 = vst.msk [vmem:[%s2213_s5 + $0x18] sm:$0xff] %vm100_vm0, %v1164_v63  ;;  %v1133_v63 = vsub.f32 2.0, %v1113_v60  ;;  %1454 = vrcp.f32 %v847_v37 }
 0x2ae   :  { %v1002_v0 = vpop.f32.mrb[8].mxu1 }
 0x2af   :  { %v1165_v12 = vmul.f32 %v1145_v11, %v1002_v0  ;;  %v1004_v54 = vpop.f32.mrb[9].mxu1  ;;  %v1449_v11 = vpop.eup %1448 }
 0x2b0   :  { %v1451_v51 = vpop.eup %1450 }
 0x2b1   :  { %1185 = vst.msk [vmem:[%s2213_s5 + $0x20] sm:$0xff] %vm100_vm0, %v1165_v12  ;;  %v1116_v47 = vmul.f32 %v1451_v51, %v839_v29 }
 0x2b2   :  { %v1007_v46 = vpop.f32.mrb[10].mxu1 }
 0x2b3   :  { %v1166_v20 = vmul.f32 %v1146_v22, %v1007_v46  ;;  %v1009_v50 = vpop.f32.mrb[11].mxu1  ;;  %v1134_v22 = vsub.f32 2.0, %v1114_v42  ;;  %v1115_v46 = vmul.f32 %v1449_v11, %v835_v15  ;;  %v1453_v55 = vpop.eup %1452  ;;  %v1136_v57 = vsub.f32 2.0, %v1116_v47 }
 0x2b4   :  { %v1153_v50 = vmul.f32 %v1445_v35, %v1133_v63  ;;  %v1117_v19 = vmul.f32 %v1453_v55, %v843_v56 }
 0x2b5   :  { %1186 = vst.msk [vmem:[%s2213_s5 + $0x28] sm:$0xff] %vm100_vm0, %v1166_v20  ;;  %v851_v20 = vpop.xlane.xlu0 %850  ;;  %v1135_v48 = vsub.f32 2.0, %v1115_v46  ;;  %v1154_v40 = vmul.f32 %v1447_v5, %v1134_v22  ;;  %v1156_v39 = vmul.f32 %v1451_v51, %v1136_v57 }
 0x2b6   :  { %1456 = vrcp.f32 %v851_v20 }
 0x2b7   :  { %v1155_v61 = vmul.f32 %v1449_v11, %v1135_v48  ;;  %v1455_v17 = vpop.eup %1454 }
 0x2c0   :  { %v1457_v10 = vpop.eup %1456 }
 0x2d4   :  { %v1012_v62 = vpop.f32.mrb[12].mxu1 }
 0x2d5   :  { %v1167_v59 = vmul.f32 %v1147_v43, %v1012_v62  ;;  %v1014_v3 = vpop.f32.mrb[13].mxu1 }
 0x2d6   :  { %v1137_v3 = vsub.f32 2.0, %v1117_v19 }
 0x2d7   :  { %1187 = vst.msk [vmem:[%s2213_s5 + $0x30] sm:$0xff] %vm100_vm0, %v1167_v59  ;;  %v1118_v59 = vmul.f32 %v1455_v17, %v847_v37 }
 0x2d8   :  { %v1017_v44 = vpop.f32.mrb[14].mxu1 }
 0x2d9   :  { %v1168_v8 = vmul.f32 %v1148_v13, %v1017_v44  ;;  %v1019_v26 = vpop.f32.mrb[15].mxu1  ;;  %v1138_v44 = vsub.f32 2.0, %v1118_v59 }
 0x2da   :  { %v1157_v26 = vmul.f32 %v1453_v55, %v1137_v3 }
 0x2db   :  { %1188 = vst.msk [vmem:[%s2213_s5 + $0x38] sm:$0xff] %vm100_vm0, %v1168_v8  ;;  %v1119_v8 = vmul.f32 %v1457_v10, %v851_v20  ;;  %v1158_v38 = vmul.f32 %v1455_v17, %v1138_v44 }
 0x2dc   :  { %v1022_v45 = vpop.f32.mrb[16].mxu1 }
 0x2dd   :  { %v1169_v30 = vmul.f32 %v1149_v28, %v1022_v45  ;;  %v1024_v21 = vpop.f32.mrb[17].mxu1  ;;  %v1139_v28 = vsub.f32 2.0, %v1119_v8 }
 0x2df   :  { %1189 = vst.msk [vmem:[%s2213_s5 + $0x40] sm:$0xff] %vm100_vm0, %v1169_v30  ;;  %v1159_v31 = vmul.f32 %v1457_v10, %v1139_v28 }
 0x2e0   :  { %v1027_v2 = vpop.f32.mrb[18].mxu1 }
 0x2e1   :  { %v1170_v27 = vmul.f32 %v1150_v34, %v1027_v2  ;;  %v1029_v32 = vpop.f32.mrb[19].mxu1 }
 0x2e3   :  { %1190 = vst.msk [vmem:[%s2213_s5 + $0x48] sm:$0xff] %vm100_vm0, %v1170_v27 }
 0x2e4   :  { %v1032_v4 = vpop.f32.mrb[20].mxu1 }
 0x2e5   :  { %v1171_v49 = vmul.f32 %v1151_v1, %v1032_v4  ;;  %v1034_v36 = vpop.f32.mrb[21].mxu1 }
 0x2e7   :  { %1191 = vst.msk [vmem:[%s2213_s5 + $0x50] sm:$0xff] %vm100_vm0, %v1171_v49 }
 0x2e8   :  { %v1037_v0 = vpop.f32.mrb[22].mxu1 }
 0x2e9   :  { %v1172_v12 = vmul.f32 %v1152_v58, %v1037_v0  ;;  %v1039_v54 = vpop.f32.mrb[23].mxu1 }
 0x2eb   :  { %1192 = vst.msk [vmem:[%s2213_s5 + $0x58] sm:$0xff] %vm100_vm0, %v1172_v12 }
 0x2ec   :  { %v1042_v16 = vpop.f32.mrb[24].mxu1 }
 0x2ed   :  { %v1173_v23 = vmul.f32 %v1153_v50, %v1042_v16  ;;  %v1044_v53 = vpop.f32.mrb[25].mxu1 }
 0x2ef   :  { %1193 = vst.msk [vmem:[%s2213_s5 + $0x60] sm:$0xff] %vm100_vm0, %v1173_v23 }
 0x2f0   :  { %v1047_v41 = vpop.f32.mrb[26].mxu1 }
 0x2f1   :  { %v1174_v52 = vmul.f32 %v1154_v40, %v1047_v41  ;;  %v1049_v14 = vpop.f32.mrb[27].mxu1 }
 0x2f3   :  { %1194 = vst.msk [vmem:[%s2213_s5 + $0x68] sm:$0xff] %vm100_vm0, %v1174_v52 }
 0x2f4   :  { %v1052_v43 = vpop.f32.mrb[28].mxu1 }
 0x2f5   :  { %v1175_v18 = vmul.f32 %v1155_v61, %v1052_v43  ;;  %v1054_v62 = vpop.f32.mrb[29].mxu1 }
 0x2f6   :  { %v855_v35 = vpop.xlane.xlu1 %854 }
 0x2f7   :  { %1195 = vst.msk [vmem:[%s2213_s5 + $0x70] sm:$0xff] %vm100_vm0, %v1175_v18  ;;  %1458 = vrcp.f32 %v855_v35 }
 0x2f8   :  { %v1057_v6 = vpop.f32.mrb[30].mxu1 }
 0x2f9   :  { %v1176_v13 = vmul.f32 %v1156_v39, %v1057_v6  ;;  %v1059_v7 = vpop.f32.mrb[31].mxu1 }
 0x2fb   :  { %1196 = vst.msk [vmem:[%s2213_s5 + $0x78] sm:$0xff] %vm100_vm0, %v1176_v13 }
 0x2fc   :  { %v1062_v25 = vpop.f32.mrb[32].mxu1 }
 0x2fd   :  { %v1177_v9 = vmul.f32 %v1157_v26, %v1062_v25  ;;  %v1064_v15 = vpop.f32.mrb[33].mxu1 }
 0x2ff   :  { %1197 = vst.msk [vmem:[%s2213_s5 + $0x80] sm:$0xff] %vm100_vm0, %v1177_v9 }
 0x300   :  { %v1067_v45 = vpop.f32.mrb[34].mxu1 }
 0x301   :  { %v1178_v30 = vmul.f32 %v1158_v38, %v1067_v45  ;;  %v1069_v21 = vpop.f32.mrb[35].mxu1  ;;  %v1459_v2 = vpop.eup %1458 }
 0x302   :  { %v1120_v27 = vmul.f32 %v1459_v2, %v855_v35 }
 0x303   :  { %1198 = vst.msk [vmem:[%s2213_s5 + $0x88] sm:$0xff] %vm100_vm0, %v1178_v30 }
 0x304   :  { %v1072_v29 = vpop.f32.mrb[36].mxu1  ;;  %v1140_v32 = vsub.f32 2.0, %v1120_v27 }
 0x305   :  { %v1179_v24 = vmul.f32 %v1159_v31, %v1072_v29  ;;  %v1074_v34 = vpop.f32.mrb[37].mxu1 }
 0x306   :  { %v1160_v33 = vmul.f32 %v1459_v2, %v1140_v32 }
 0x307   :  { %1199 = vst.msk [vmem:[%s2213_s5 + $0x90] sm:$0xff] %vm100_vm0, %v1179_v24 }
 0x33a   :  { %v1077_v60 = vpop.f32.mrb[38].mxu1 }
 0x33b   :  { %v1180_v56 = vmul.f32 %v1160_v33, %v1077_v60  ;;  %v1079_v1 = vpop.f32.mrb[39].mxu1 }
 0x33d   :  { %1200 = vst.msk [vmem:[%s2213_s5 + $0x98] sm:$0xff] %vm100_vm0, %v1180_v56 }

</bundles_post_ra>
